<compile_context>
chip_gen: v7x
topology: tpu7x:2x2x1
jax: 0.10.0
libtpu: 0.0.40
codegen_flags: <defaults>
</compile_context>

<pallas_src>
import jax
import jax.numpy as jnp
from jax import lax
from jax.experimental import pallas as pl
from jax.experimental.pallas import tpu as pltpu


def _cb_kernel(x_ref, w_ref, b_ref, o_ref):
    # x_ref: (1, KK, Cin, T)   input taps, native dtype
    # w_ref: (KK, Cout, Cin)   BN-folded conv weights
    # b_ref: (Cout, 1)         BN-folded per-channel shift (f32)
    # o_ref: (1, Cout, T)      output tile (lane-dense last dim)
    kk = x_ref.shape[1]
    cout = w_ref.shape[1]
    t = x_ref.shape[3]

    acc = jnp.zeros((cout, t), dtype=jnp.float32)
    for tap in range(kk):  # K*K is small (e.g. 9); static unroll is fine
        acc = acc + jnp.dot(w_ref[tap], x_ref[0, tap],
                            preferred_element_type=jnp.float32)
    o_ref[0] = (acc + b_ref[...]).astype(o_ref.dtype)


def _pick_hw_tile(hw):
    # Lane-dense tiles (multiple of 128), capped at 2048 lanes for VMEM;
    # fall back to the full extent when HW is not 128-aligned (still correct).
    if hw % 128 != 0:
        return hw
    for t in (2048, 1024, 512, 256, 128):
        if hw % t == 0:
            return t
    return hw


def cb_forward(x, conv_w, bn_gamma, bn_beta, bn_mean, bn_var, *,
               stride=1, eps=1e-3):
    """x: (N, Cin, H, W); conv_w: (Cout, Cin, K, K); BN params: (Cout,)."""
    N, Cin, H, W = x.shape
    Cout, Cin_w, K, K2 = conv_w.shape
    assert Cin == Cin_w and K == K2
    p = (K - 1) // 2
    Ho = (H + 2 * p - K) // stride + 1
    Wo = (W + 2 * p - K) // stride + 1
    HW = Ho * Wo
    KK = K * K

    # Fold inference-mode BatchNorm into the conv weights / per-channel shift.
    scale = (bn_gamma.astype(jnp.float32)
             * lax.rsqrt(bn_var.astype(jnp.float32) + eps))
    shift = (bn_beta.astype(jnp.float32)
             - bn_mean.astype(jnp.float32) * scale).reshape(Cout, 1)
    w_folded = conv_w.astype(jnp.float32) * scale[:, None, None, None]
    # tap-major layout, tap index = kh*K + kw
    w_taps = jnp.transpose(w_folded, (2, 3, 0, 1)).reshape(KK, Cout, Cin)
    w_taps = w_taps.astype(x.dtype)

    # Shifted / strided taps of the zero-padded input: (N, KK, Cin, Ho*Wo).
    xp = jnp.pad(x, ((0, 0), (0, 0), (p, p), (p, p)))
    taps = []
    for kh in range(K):
        for kw in range(K):
            sl = lax.slice(
                xp,
                (0, 0, kh, kw),
                (N, Cin, kh + (Ho - 1) * stride + 1,
                 kw + (Wo - 1) * stride + 1),
                (1, 1, stride, stride))
            taps.append(sl.reshape(N, Cin, HW))
    x_taps = jnp.stack(taps, axis=1)  # (N, KK, Cin, HW)

    T = _pick_hw_tile(HW)
    grid = (N, HW // T)

    dsize = jnp.dtype(x.dtype).itemsize
    cost = pl.CostEstimate(
        flops=2 * N * HW * Cout * Cin * KK,
        transcendentals=0,
        bytes_accessed=(x_taps.size + w_taps.size) * dsize
                       + shift.size * 4 + N * Cout * HW * dsize)

    out_flat = pl.pallas_call(
        _cb_kernel,
        out_shape=jax.ShapeDtypeStruct((N, Cout, HW), x.dtype),
        grid_spec=pltpu.PrefetchScalarGridSpec(
            num_scalar_prefetch=0,
            grid=grid,
            in_specs=[
                pl.BlockSpec((1, KK, Cin, T), lambda n, j: (n, 0, 0, j)),
                pl.BlockSpec((KK, Cout, Cin), lambda n, j: (0, 0, 0)),
                pl.BlockSpec((Cout, 1), lambda n, j: (0, 0)),
            ],
            out_specs=pl.BlockSpec((1, Cout, T), lambda n, j: (n, 0, j)),
        ),
        compiler_params=pltpu.CompilerParams(
            dimension_semantics=("parallel", "parallel")),
        cost_estimate=cost,
    )(x_taps, w_taps, shift)

    return out_flat.reshape(N, Cout, Ho, Wo)


def _reference(x, conv_w, gamma, beta, mean, var, *, stride, eps):
    # pure-JAX reference of the torch forward (conv -> eval-mode BN)
    K = conv_w.shape[-1]
    p = (K - 1) // 2
    y = lax.conv_general_dilated(
        x, conv_w, window_strides=(stride, stride),
        padding=((p, p), (p, p)),
        dimension_numbers=("NCHW", "OIHW", "NCHW"))
    scale = gamma / jnp.sqrt(var + eps)
    shift = beta - mean * scale
    return y * scale[None, :, None, None] + shift[None, :, None, None]


if __name__ == "__main__":
    N, Cin, Cout, H, W, K, stride = 2, 4, 8, 16, 16, 3, 1
    key = jax.random.PRNGKey(0)
    kx, kw, kg, kb, km, kv = jax.random.split(key, 6)

    x = jax.random.normal(kx, (N, Cin, H, W), dtype=jnp.float32)
    conv_w = jax.random.normal(kw, (Cout, Cin, K, K), dtype=jnp.float32) * 0.1
    gamma = 1.0 + 0.1 * jax.random.normal(kg, (Cout,), dtype=jnp.float32)
    beta = 0.1 * jax.random.normal(kb, (Cout,), dtype=jnp.float32)
    mean = 0.1 * jax.random.normal(km, (Cout,), dtype=jnp.float32)
    var = jax.random.uniform(kv, (Cout,), dtype=jnp.float32,
                             minval=0.5, maxval=1.5)

    out = cb_forward(x, conv_w, gamma, beta, mean, var, stride=stride, eps=1e-3)
    out = jax.block_until_ready(out)

    ref = _reference(x, conv_w, gamma, beta, mean, var, stride=stride, eps=1e-3)
    assert out.shape == ref.shape
    assert jnp.allclose(out, ref, atol=1e-4, rtol=1e-4), "mismatch vs reference"

    print("KERNEL_OK")
</pallas_src>

<mosaic_0001>
module attributes {stable_mosaic.version = 11 : i64} {
  func.func @_cb_kernel(%arg0: i32, %arg1: i32, %arg2: memref<1x9x4x256xf32, #tpu.memory_space<vmem>>, %arg3: memref<9x8x4xf32, #tpu.memory_space<vmem>>, %arg4: memref<8x1xf32, #tpu.memory_space<vmem>>, %arg5: memref<1x8x256xf32, #tpu.memory_space<vmem>>) attributes {dimension_semantics = [#tpu.dimension_semantics<parallel>, #tpu.dimension_semantics<parallel>], iteration_bounds = array<i64: 2, 1>, scalar_prefetch = 0 : i64, scratch_operands = 0 : i64, tpu.core_type = #tpu.core_type<tc>, window_params = [{transform_indices = @transform_0, window_bounds = array<i64: 1, 9, 4, 256>}, {pipeline_mode = #tpu.pipeline_mode<synchronous>, transform_indices = @transform_1, window_bounds = array<i64: 9, 8, 4>}, {pipeline_mode = #tpu.pipeline_mode<synchronous>, transform_indices = @transform_2, window_bounds = array<i64: 8, 1>}, {transform_indices = @transform_3, window_bounds = array<i64: 1, 8, 256>}]} {
    %cst = arith.constant 0.000000e+00 : f32
    %0 = vector.broadcast %cst : f32 to vector<8x256xf32>
    %c0 = arith.constant 0 : index
    %c0_0 = arith.constant 0 : index
    %c0_1 = arith.constant 0 : index
    %1 = vector.load %arg3[%c0, %c0_0, %c0_1] : memref<9x8x4xf32, #tpu.memory_space<vmem>>, vector<1x8x4xf32>
    %2 = vector.shape_cast %1 : vector<1x8x4xf32> to vector<8x4xf32>
    %c0_2 = arith.constant 0 : index
    %c0_3 = arith.constant 0 : index
    %c0_4 = arith.constant 0 : index
    %c0_5 = arith.constant 0 : index
    %3 = vector.load %arg2[%c0_2, %c0_3, %c0_4, %c0_5] : memref<1x9x4x256xf32, #tpu.memory_space<vmem>>, vector<1x1x4x256xf32>
    %4 = vector.shape_cast %3 : vector<1x1x4x256xf32> to vector<4x256xf32>
    %cst_6 = arith.constant dense<0.000000e+00> : vector<8x256xf32>
    %5 = tpu.matmul %2, %4, %cst_6 {dimension_numbers = #tpu.dot_dimension_numbers<[1], [0], [0], [1], [0, 0, 1, 1], [], []>} : vector<8x4xf32>, vector<4x256xf32>, vector<8x256xf32> -> vector<8x256xf32>
    %6 = arith.addf %0, %5 : vector<8x256xf32>
    %c1 = arith.constant 1 : index
    %c0_7 = arith.constant 0 : index
    %c0_8 = arith.constant 0 : index
    %7 = vector.load %arg3[%c1, %c0_7, %c0_8] : memref<9x8x4xf32, #tpu.memory_space<vmem>>, vector<1x8x4xf32>
    %8 = vector.shape_cast %7 : vector<1x8x4xf32> to vector<8x4xf32>
    %c0_9 = arith.constant 0 : index
    %c1_10 = arith.constant 1 : index
    %c0_11 = arith.constant 0 : index
    %c0_12 = arith.constant 0 : index
    %9 = vector.load %arg2[%c0_9, %c1_10, %c0_11, %c0_12] : memref<1x9x4x256xf32, #tpu.memory_space<vmem>>, vector<1x1x4x256xf32>
    %10 = vector.shape_cast %9 : vector<1x1x4x256xf32> to vector<4x256xf32>
    %cst_13 = arith.constant dense<0.000000e+00> : vector<8x256xf32>
    %11 = tpu.matmul %8, %10, %cst_13 {dimension_numbers = #tpu.dot_dimension_numbers<[1], [0], [0], [1], [0, 0, 1, 1], [], []>} : vector<8x4xf32>, vector<4x256xf32>, vector<8x256xf32> -> vector<8x256xf32>
    %12 = arith.addf %6, %11 : vector<8x256xf32>
    %c2 = arith.constant 2 : index
    %c0_14 = arith.constant 0 : index
    %c0_15 = arith.constant 0 : index
    %13 = vector.load %arg3[%c2, %c0_14, %c0_15] : memref<9x8x4xf32, #tpu.memory_space<vmem>>, vector<1x8x4xf32>
    %14 = vector.shape_cast %13 : vector<1x8x4xf32> to vector<8x4xf32>
    %c0_16 = arith.constant 0 : index
    %c2_17 = arith.constant 2 : index
    %c0_18 = arith.constant 0 : index
    %c0_19 = arith.constant 0 : index
    %15 = vector.load %arg2[%c0_16, %c2_17, %c0_18, %c0_19] : memref<1x9x4x256xf32, #tpu.memory_space<vmem>>, vector<1x1x4x256xf32>
    %16 = vector.shape_cast %15 : vector<1x1x4x256xf32> to vector<4x256xf32>
    %cst_20 = arith.constant dense<0.000000e+00> : vector<8x256xf32>
    %17 = tpu.matmul %14, %16, %cst_20 {dimension_numbers = #tpu.dot_dimension_numbers<[1], [0], [0], [1], [0, 0, 1, 1], [], []>} : vector<8x4xf32>, vector<4x256xf32>, vector<8x256xf32> -> vector<8x256xf32>
    %18 = arith.addf %12, %17 : vector<8x256xf32>
    %c3 = arith.constant 3 : index
    %c0_21 = arith.constant 0 : index
    %c0_22 = arith.constant 0 : index
    %19 = vector.load %arg3[%c3, %c0_21, %c0_22] : memref<9x8x4xf32, #tpu.memory_space<vmem>>, vector<1x8x4xf32>
    %20 = vector.shape_cast %19 : vector<1x8x4xf32> to vector<8x4xf32>
    %c0_23 = arith.constant 0 : index
    %c3_24 = arith.constant 3 : index
    %c0_25 = arith.constant 0 : index
    %c0_26 = arith.constant 0 : index
    %21 = vector.load %arg2[%c0_23, %c3_24, %c0_25, %c0_26] : memref<1x9x4x256xf32, #tpu.memory_space<vmem>>, vector<1x1x4x256xf32>
    %22 = vector.shape_cast %21 : vector<1x1x4x256xf32> to vector<4x256xf32>
    %cst_27 = arith.constant dense<0.000000e+00> : vector<8x256xf32>
    %23 = tpu.matmul %20, %22, %cst_27 {dimension_numbers = #tpu.dot_dimension_numbers<[1], [0], [0], [1], [0, 0, 1, 1], [], []>} : vector<8x4xf32>, vector<4x256xf32>, vector<8x256xf32> -> vector<8x256xf32>
    %24 = arith.addf %18, %23 : vector<8x256xf32>
    %c4 = arith.constant 4 : index
    %c0_28 = arith.constant 0 : index
    %c0_29 = arith.constant 0 : index
    %25 = vector.load %arg3[%c4, %c0_28, %c0_29] : memref<9x8x4xf32, #tpu.memory_space<vmem>>, vector<1x8x4xf32>
    %26 = vector.shape_cast %25 : vector<1x8x4xf32> to vector<8x4xf32>
    %c0_30 = arith.constant 0 : index
    %c4_31 = arith.constant 4 : index
    %c0_32 = arith.constant 0 : index
    %c0_33 = arith.constant 0 : index
    %27 = vector.load %arg2[%c0_30, %c4_31, %c0_32, %c0_33] : memref<1x9x4x256xf32, #tpu.memory_space<vmem>>, vector<1x1x4x256xf32>
    %28 = vector.shape_cast %27 : vector<1x1x4x256xf32> to vector<4x256xf32>
    %cst_34 = arith.constant dense<0.000000e+00> : vector<8x256xf32>
    %29 = tpu.matmul %26, %28, %cst_34 {dimension_numbers = #tpu.dot_dimension_numbers<[1], [0], [0], [1], [0, 0, 1, 1], [], []>} : vector<8x4xf32>, vector<4x256xf32>, vector<8x256xf32> -> vector<8x256xf32>
    %30 = arith.addf %24, %29 : vector<8x256xf32>
    %c5 = arith.constant 5 : index
    %c0_35 = arith.constant 0 : index
    %c0_36 = arith.constant 0 : index
    %31 = vector.load %arg3[%c5, %c0_35, %c0_36] : memref<9x8x4xf32, #tpu.memory_space<vmem>>, vector<1x8x4xf32>
    %32 = vector.shape_cast %31 : vector<1x8x4xf32> to vector<8x4xf32>
    %c0_37 = arith.constant 0 : index
    %c5_38 = arith.constant 5 : index
    %c0_39 = arith.constant 0 : index
    %c0_40 = arith.constant 0 : index
    %33 = vector.load %arg2[%c0_37, %c5_38, %c0_39, %c0_40] : memref<1x9x4x256xf32, #tpu.memory_space<vmem>>, vector<1x1x4x256xf32>
    %34 = vector.shape_cast %33 : vector<1x1x4x256xf32> to vector<4x256xf32>
    %cst_41 = arith.constant dense<0.000000e+00> : vector<8x256xf32>
    %35 = tpu.matmul %32, %34, %cst_41 {dimension_numbers = #tpu.dot_dimension_numbers<[1], [0], [0], [1], [0, 0, 1, 1], [], []>} : vector<8x4xf32>, vector<4x256xf32>, vector<8x256xf32> -> vector<8x256xf32>
    %36 = arith.addf %30, %35 : vector<8x256xf32>
    %c6 = arith.constant 6 : index
    %c0_42 = arith.constant 0 : index
    %c0_43 = arith.constant 0 : index
    %37 = vector.load %arg3[%c6, %c0_42, %c0_43] : memref<9x8x4xf32, #tpu.memory_space<vmem>>, vector<1x8x4xf32>
    %38 = vector.shape_cast %37 : vector<1x8x4xf32> to vector<8x4xf32>
    %c0_44 = arith.constant 0 : index
    %c6_45 = arith.constant 6 : index
    %c0_46 = arith.constant 0 : index
    %c0_47 = arith.constant 0 : index
    %39 = vector.load %arg2[%c0_44, %c6_45, %c0_46, %c0_47] : memref<1x9x4x256xf32, #tpu.memory_space<vmem>>, vector<1x1x4x256xf32>
    %40 = vector.shape_cast %39 : vector<1x1x4x256xf32> to vector<4x256xf32>
    %cst_48 = arith.constant dense<0.000000e+00> : vector<8x256xf32>
    %41 = tpu.matmul %38, %40, %cst_48 {dimension_numbers = #tpu.dot_dimension_numbers<[1], [0], [0], [1], [0, 0, 1, 1], [], []>} : vector<8x4xf32>, vector<4x256xf32>, vector<8x256xf32> -> vector<8x256xf32>
    %42 = arith.addf %36, %41 : vector<8x256xf32>
    %c7 = arith.constant 7 : index
    %c0_49 = arith.constant 0 : index
    %c0_50 = arith.constant 0 : index
    %43 = vector.load %arg3[%c7, %c0_49, %c0_50] : memref<9x8x4xf32, #tpu.memory_space<vmem>>, vector<1x8x4xf32>
    %44 = vector.shape_cast %43 : vector<1x8x4xf32> to vector<8x4xf32>
    %c0_51 = arith.constant 0 : index
    %c7_52 = arith.constant 7 : index
    %c0_53 = arith.constant 0 : index
    %c0_54 = arith.constant 0 : index
    %45 = vector.load %arg2[%c0_51, %c7_52, %c0_53, %c0_54] : memref<1x9x4x256xf32, #tpu.memory_space<vmem>>, vector<1x1x4x256xf32>
    %46 = vector.shape_cast %45 : vector<1x1x4x256xf32> to vector<4x256xf32>
    %cst_55 = arith.constant dense<0.000000e+00> : vector<8x256xf32>
    %47 = tpu.matmul %44, %46, %cst_55 {dimension_numbers = #tpu.dot_dimension_numbers<[1], [0], [0], [1], [0, 0, 1, 1], [], []>} : vector<8x4xf32>, vector<4x256xf32>, vector<8x256xf32> -> vector<8x256xf32>
    %48 = arith.addf %42, %47 : vector<8x256xf32>
    %c8 = arith.constant 8 : index
    %c0_56 = arith.constant 0 : index
    %c0_57 = arith.constant 0 : index
    %49 = vector.load %arg3[%c8, %c0_56, %c0_57] : memref<9x8x4xf32, #tpu.memory_space<vmem>>, vector<1x8x4xf32>
    %50 = vector.shape_cast %49 : vector<1x8x4xf32> to vector<8x4xf32>
    %c0_58 = arith.constant 0 : index
    %c8_59 = arith.constant 8 : index
    %c0_60 = arith.constant 0 : index
    %c0_61 = arith.constant 0 : index
    %51 = vector.load %arg2[%c0_58, %c8_59, %c0_60, %c0_61] : memref<1x9x4x256xf32, #tpu.memory_space<vmem>>, vector<1x1x4x256xf32>
    %52 = vector.shape_cast %51 : vector<1x1x4x256xf32> to vector<4x256xf32>
    %cst_62 = arith.constant dense<0.000000e+00> : vector<8x256xf32>
    %53 = tpu.matmul %50, %52, %cst_62 {dimension_numbers = #tpu.dot_dimension_numbers<[1], [0], [0], [1], [0, 0, 1, 1], [], []>} : vector<8x4xf32>, vector<4x256xf32>, vector<8x256xf32> -> vector<8x256xf32>
    %54 = arith.addf %48, %53 : vector<8x256xf32>
    %c0_63 = arith.constant 0 : index
    %c0_64 = arith.constant 0 : index
    %55 = vector.load %arg4[%c0_63, %c0_64] : memref<8x1xf32, #tpu.memory_space<vmem>>, vector<8x1xf32>
    %56 = vector.broadcast %55 : vector<8x1xf32> to vector<8x256xf32>
    %57 = arith.addf %54, %56 : vector<8x256xf32>
    %c0_65 = arith.constant 0 : index
    %c0_66 = arith.constant 0 : index
    %c0_67 = arith.constant 0 : index
    %58 = vector.load %arg5[%c0_65, %c0_66, %c0_67] : memref<1x8x256xf32, #tpu.memory_space<vmem>>, vector<1x8x256xf32>
    %59 = vector.shape_cast %58 : vector<1x8x256xf32> to vector<8x256xf32>
    %60 = vector.shape_cast %57 : vector<8x256xf32> to vector<1x8x256xf32>
    tpu.vector_store %arg5[%c0_65, %c0_66, %c0_67], %60 {strides = array<i32>} : memref<1x8x256xf32, #tpu.memory_space<vmem>>, vector<1x8x256xf32>,
    return
  }
  func.func @transform_0(%arg0: i32, %arg1: i32) -> (i32, i32, i32, i32) {
    %c0_i32 = arith.constant 0 : i32
    %c0_i32_0 = arith.constant 0 : i32
    %c0_i32_1 = arith.constant 0 : i32
    return %arg0, %c0_i32, %c0_i32_0, %arg1 : i32, i32, i32, i32
  }
  func.func @transform_1(%arg0: i32, %arg1: i32) -> (i32, i32, i32) {
    %c0_i32 = arith.constant 0 : i32
    %c0_i32_0 = arith.constant 0 : i32
    %c0_i32_1 = arith.constant 0 : i32
    %c0_i32_2 = arith.constant 0 : i32
    return %c0_i32, %c0_i32_0, %c0_i32_1 : i32, i32, i32
  }
  func.func @transform_2(%arg0: i32, %arg1: i32) -> (i32, i32) {
    %c0_i32 = arith.constant 0 : i32
    %c0_i32_0 = arith.constant 0 : i32
    %c0_i32_1 = arith.constant 0 : i32
    return %c0_i32, %c0_i32_0 : i32, i32
  }
  func.func @transform_3(%arg0: i32, %arg1: i32) -> (i32, i32, i32) {
    %c0_i32 = arith.constant 0 : i32
    %c0_i32_0 = arith.constant 0 : i32
    return %arg0, %c0_i32, %arg1 : i32, i32, i32
  }
}

</mosaic_0001>

<bundles_post_ra>
// kernel: tpu_custom_call.1
= control target key start
LH: loop header
LB: loop body
LE: loop exit
PB: predicated region body
PF: predicated region fallthrough
CT: control target
= control target key end

     0   :  { %8 = vsyncpa [#allocation3], 0  ;;  %s1632_s0 = inlined_call_operand.hbm [shape: f32[2,9,4,256], index: 0, kind: input, shape index: {}]   ;;  %s1633_s1 = inlined_call_operand.vmem [shape: f32[9,8,4], index: 1, kind: input, shape index: {}]   ;;  %s1634_s2 = inlined_call_operand.vmem [shape: f32[8,1], index: 2, kind: input, shape index: {}]   ;;  %s1635_s3 = inlined_call_operand.hbm [shape: f32[2,8,256], index: 3, kind: output, shape index: {}]  }
   0x1   :  { %10 = vsyncpa [#allocation3 + $0x1], 0 }
   0x2   :  { %11 = vsyncpa [#allocation4], 0 }
   0x3   :  { %13 = vsyncpa [#allocation4 + $0x1], 0  ;;  %s1381_s12 = smov 0   ;;  %s1383_s13 = smov 0  }
   0x4   :  { %s1385_s14 = smov 0   ;;  %s1387_s15 = smov 0  }
   0x5   :  { %s1389_s16 = smov 0   ;;  %s1391_s17 = smov 0  }
   0x6 LB: > { %s1090_s18 = sadd.s32 4294967295, %s1353_s17   ;;  %s1091_s19 = sadd.s32 4294967294, %s1353_s17   ;;  %s1353_s17 = sphi %s1391_s17, %s19_s17   ;;  %s1349_s16 = sphi %s1389_s16, %s1650_s16   ;;  %s1345_s15 = sphi %s1387_s15, %s1649_s15   ;;  %s1341_s14 = sphi %s1385_s14, %s1648_s14   ;;  %s1337_s13 = sphi %s1383_s13, %s1647_s13   ;;  %s1333_s12 = sphi %s1381_s12, %s1646_s12  }
   0x7   : > { %s31_s20 = sadd.s32 1, %s1349_s16  ;;  %s40_s21 = sadd.s32 1, %s1341_s14 }
   0x8   : > { %p33_p0 = scmp.ge.s32.totalorder %s31_s20, 2  ;;  %p47_p1 = scmp.ne.s32.totalorder %s1341_s14, %s1337_s13 }
   0x9   : > { %p48_p2 = scmp.eq.s32.totalorder %s1353_s17, 0  ;;  %p53_p3 = scmp.ne.s32.totalorder %s1337_s13, %s1333_s12 }
   0xa   : > { %s1652_s20 = smov (%p33_p0, %s31_s20), 0  ;;  %p54_p5 = scmp.eq.s32.totalorder %s1090_s18, 0 }
   0xb   : > { %p1422_p4 = por %p48_p2, %p47_p1  ;;  %s35_s23 = ssub.s32 %s1349_s16, %s1652_s20 }
   0xc   : > { %p121_p6 = scmp.eq.s32.totalorder %s1090_s18, 1  ;;  %p38_p7 = scmp.eq.s32.totalorder %s35_s23, 0 }
   0xd   : > { %p1428_p8 = por %p54_p5, %p53_p3  ;;  %p127_p10 = scmp.eq.s32.totalorder %s1091_s19, 1 }
   0xe   : > { %p1432_p9 = por %p121_p6, %p47_p1  ;;  %p1177_p13 = scmp.lt.s32.totalorder %s1353_s17, 2 }
   0xf   : > { %s1437_s26 = scalar_select %p38_p7, %s1341_s14, %s40_s21  }
  0x10   : > { %s1639_s25 = scalar_select %p1432_p9, 1, 0 }
  0x11   : > { %p1439_p11 = por %p127_p10, %p53_p3  ;;  %s153_s28 = sand.u32 1, %s1341_s14  }
  0x12   : > { %s1162_s29 = smul.u32 72, %s153_s28  ;;  %p1449_p0 = pnand %p1177_p13, %p1422_p4 }
  0x13   : > { %s1640_s27 = scalar_select %p1439_p11, 1, 0 }
  0x14   : > { %s1163_s30 = smul.u32 1152, %s1349_s16  ;;  %s157_s8 = scalar_lea.vmem [#allocation2], %s1162_s29 }
  0x15   : > { %s166_s9 = sshll.u32 %s157_s8, 4  ;;  %s1461_s10 = scalar_lea.sflag [#allocation3], %s153_s28  ;;  %s1458_s9 = int_to_ptr.vmem [resolvable:$true] %s166_s9 }
  0x16   : > { %s1456_s7 = scalar_lea.hbm %s1632_s0, %s1163_s30  ;;  %p1243_p3 = pneg %p1449_p0 }
  0x17   : > { %s1241_s11 = scalar_lea.hbm %s1456_s7, 1152  ;;  %s1246_s21 = scalar_lea.hbm %s1632_s0, 2304 }
  0x18   : > { %p1242_p2 = scmp.ne.s32.totalorder %s1456_s7, %s1241_s11  ;;  %p1247_p6 = scmp.lt.u32.totalorder %s1456_s7, %s1632_s0 }
  0x19   : > { %p1248_p7 = scmp.lt.u32.totalorder %s1246_s21, %s1241_s11  ;;  %p1250_p13 = scmp.lt.u32.totalorder %s1241_s11, %s1456_s7 }
  0x1a   : > { %p1244_p4 = pnand %p1243_p3, %p1242_p2 }
  0x1b   : > { %p1249_p10 = por %p1248_p7, %p1247_p6 }
  0x1c   : > { %p1245_p5 = pneg %p1244_p4 }
  0x1d   : > { %p1251_p12 = por %p1250_p13, %p1249_p10 }
  0x1f   : > { %p1252_p1 = pnand %p1251_p12, %p1245_p5 }
  0x21   : > { %1255 = shalt.err (!%p1252_p1)
}
  0x22   : > { %s1256_s28 = scalar_lea.vmem %s1458_s9, 1152  ;;  %s1355_s29 = smov [#allocation2]  }
  0x23   : > { %p1257_p2 = scmp.ne.s32.totalorder %s1458_s9, %s1256_s28  ;;  %s1261_s30 = sshll.u32 %s1355_s29, 4  ;;  %s1262_s30 = int_to_ptr.vmem [resolvable:$false] %s1261_s30 }
  0x24   : > { %s1263_s5 = scalar_lea.vmem %s1262_s30, 2304  ;;  %p1264_p9 = scmp.lt.s32.totalorder %s1458_s9, %s1262_s30 }
  0x25   : > { %p1259_p4 = pnand %p1257_p2, %p1243_p3  ;;  %p1265_p6 = scmp.lt.s32.totalorder %s1263_s5, %s1256_s28 }
  0x27   : > { %p1260_p11 = pneg %p1259_p4  ;;  %p1266_p7 = por %p1265_p6, %p1264_p9 }
  0x29   : > { %p1267_p10 = pnand %p1266_p7, %p1260_p11 }
  0x2b   : > { %1270 = shalt.err (!%p1267_p10)
}
  0x2c   : > { %s1356_s6 = smov 128   ;;  %s1357_s8 = smov 8  }
  0x2d   : > { %1172 = dma.hbm_to_vmem [thread:$0]  (!%p1449_p0), %s1456_s7, 1152, %s1458_s9, %s1461_s10, %s1356_s6, %s1356_s6, %s1357_s8  }
  0x2e   : > { %p174_p12 = scmp.lt.s32.totalorder %s1353_s17, 3  ;;  %p1642_p1 = scmp.ge.s32.totalorder %s1353_s17, 1 }
  0x30   : > { %p175_p3 = pnand %p1642_p1, %p174_p12 }
  0x31   : > { %s1493_s11 = sand.u32 (!%p175_p3), 1, %s1337_s13  }
  0x32   : > { %178 = sbr.rel (%p175_p3) target bundleno = 326 (0x146), region = 32  ;;  %s181_s19 = scalar_lea.sflag (!%p175_p3), [#allocation3], %s1493_s11 }
  0x33   : > { %s1164_s18 = smul.u32 (!%p175_p3), 72, %s1493_s11 }
  0x35   : > { %s1497_s21 = scalar_lea.vmem (!%p175_p3), [#allocation2], %s1164_s18 }
  0x39   : > { %1324 = dma.done.wait (%p1428_p8), %s181_s19, 1152  }
  0x3a   : > { %1326 = vsyncadd (%p1428_p8), %s181_s19, 4294966144  ;;  %v1358_v0 = vmov 0.0   ;;  %v1359_v1 = vmov 0   ;;  %v1098_v2 = vld [vmem:[%s1497_s21 + $0x8] sm:$0xff]  ;;  %vm221_vm0 = vcmask 1043456   ;;  %v1116_v3 = vld [vmem:[%s1497_s21 + $0x20] sm:$0xff] }
  0x3b   : > { %290 = vmatprep.mubr.f32.mxu1 %v1358_v0  ;;  %626 = vmatprep.mubr.f32.mxu0 %v1358_v0  ;;  %v216_v4 = vcombine.high %v1098_v2, %v1098_v2  ;;  %v554_v5 = vcombine.high %v1116_v3, %v1116_v3  ;;  %v1121_v6 = vld [vmem:[%s1497_s21 + $0x28] sm:$0xff]  ;;  %v210_v7 = vld [vmem:[%s1497_s21] sm:$0xff]  ;;  %vm217_vm1 = vcmask 31744   ;;  %v1126_v12 = vld [vmem:[%s1497_s21 + $0x30] sm:$0xff]  ;;  %s1096_s10 = sshll.u32 %s1493_s11, 4  ;;  %s1145_s22 = sshll.u32 %s1345_s15, 8 }
  0x3c   : > { %1231 = vset.pattern.permute.xlu0 %v1359_v1  ;;  %v1097_v8 = vld [vmem:[%s1633_s1 + $0x8] sm:$0xff]  ;;  %v1115_v9 = vld [vmem:[%s1633_s1 + $0x20] sm:$0xff]  ;;  %v640_v10 = vcombine.high %v1121_v6, %v1121_v6  ;;  %v298_v11 = vcombine.high %v210_v7, %v210_v7  ;;  %v1106_v13 = vld [vmem:[%s1497_s21 + $0x10] sm:$0xff]  ;;  %v726_v14 = vcombine.high %v1126_v12, %v1126_v12  ;;  %s206_s23 = scalar_lea.vmem [#allocation5], %s1096_s10  ;;  %s1583_s5 = scalar_lea.hbm %s1635_s3, %s1145_s22 }
  0x3d   : > { %1099 = vmatprep.subr.msk.mxu1 %vm221_vm0, %v216_v4  ;;  %1117 = vmatprep.subr.msk.mxu0 %vm221_vm0, %v554_v5  ;;  %v382_v15 = vcombine.high %v1106_v13, %v1106_v13  ;;  %v979_v16 = vld [vmem:[%s1634_s2] sm:$0xff]  ;;  %v1120_v20 = vld [vmem:[%s1633_s1 + $0x28] sm:$0xff]  ;;  %v1105_v24 = vld [vmem:[%s1633_s1 + $0x10] sm:$0xff]  ;;  %s1006_s28 = sshll.u32 %s206_s23, 4  ;;  %s990_s6 = scalar_lea.sflag [#allocation4], %s1493_s11  ;;  %s1585_s28 = int_to_ptr.vmem [resolvable:$true] %s1006_s28 }
  0x3e   : > { %1100 = vmatpush1.msk.msra.mxu1 %vm221_vm0, %v1098_v2  ;;  %1118 = vmatpush1.msk.msra.mxu0 %vm221_vm0, %v1116_v3  ;;  %v1131_v17 = vld [vmem:[%s1497_s21 + $0x38] sm:$0xff]  ;;  %v1136_v23 = vld [vmem:[%s1497_s21 + $0x40] sm:$0xff]  ;;  %v1125_v25 = vld [vmem:[%s1633_s1 + $0x30] sm:$0xff]  ;;  %s1271_s8 = scalar_lea.vmem %s1585_s28, 256  ;;  %p1643_p9 = scmp.ne.s32.totalorder %s1639_s25, 0 }
  0x3f   : > { %1101 = vmatmul.mubr.msk.f32.vlgmr.msra.gmra.mrb[0].mxu1 %vm217_vm1, %v1097_v8  ;;  %1119 = vmatmul.mubr.msk.f32.vlgmr.msra.gmra.mrb[0].mxu0 %vm217_vm1, %v1115_v9  ;;  %v1111_v18 = vld [vmem:[%s1497_s21 + $0x18] sm:$0xff]  ;;  %v812_v21 = vcombine.high %v1131_v17, %v1131_v17  ;;  %v898_v26 = vcombine.high %v1136_v23, %v1136_v23  ;;  %p1272_p8 = scmp.ne.s32.totalorder %s1585_s28, %s1271_s8  ;;  %s1360_s15 = smov [#allocation5]  }
  0x40   : > { %1122 = vmatprep.subr.msk.mxu0 %vm221_vm0, %v640_v10  ;;  %1102 = vmatprep.subr.msk.mxu1 %vm221_vm0, %v298_v11  ;;  %v209_v19 = vld [vmem:[%s1633_s1] sm:$0xff]  ;;  %v468_v22 = vcombine.high %v1111_v18, %v1111_v18  ;;  %v1110_v27 = vld [vmem:[%s1633_s1 + $0x18] sm:$0xff]  ;;  %s1275_s18 = sshll.u32 %s1360_s15, 4  ;;  %s1276_s18 = int_to_ptr.vmem [resolvable:$false] %s1275_s18 }
  0x41   : > { %1123 = vmatpush1.msk.msra.mxu0 %vm221_vm0, %v1121_v6  ;;  %1103 = vmatpush1.msk.msra.mxu1 %vm221_vm0, %v210_v7  ;;  %v1130_v28 = vld [vmem:[%s1633_s1 + $0x38] sm:$0xff]  ;;  %v1135_v29 = vld [vmem:[%s1633_s1 + $0x40] sm:$0xff]  ;;  %p1273_p11 = pnand %p1272_p8, %p1643_p9  ;;  %s1277_s19 = scalar_lea.vmem %s1276_s18, 512 }
  0x42   : > { %370 = vmatprep.mubr.f32.mxu1 %v1358_v0  ;;  %712 = vmatprep.mubr.f32.mxu0 %v1358_v0  ;;  %p1278_p5 = scmp.lt.s32.totalorder %s1585_s28, %s1276_s18  ;;  %p1279_p13 = scmp.lt.s32.totalorder %s1277_s19, %s1271_s8 }
  0x43   : > { %1127 = vmatprep.subr.msk.mxu0 %vm221_vm0, %v726_v14  ;;  %1107 = vmatprep.subr.msk.mxu1 %vm221_vm0, %v382_v15  ;;  %p1274_p0 = pneg %p1273_p11 }
  0x44   : > { %982 = vperm.xlu0 %1231, %v979_v16   ;;  %p1280_p2 = por %p1279_p13, %p1278_p5 }
  0x46   : > { %p1281_p4 = pnand %p1280_p2, %p1274_p0 }
  0x47   : > { %1104 = vmatmul.mubr.msk.f32.vlgmr.msra.gmra.mrb[0].mxu1 %vm217_vm1, %v209_v19  ;;  %1124 = vmatmul.mubr.msk.f32.vlgmr.msra.gmra.mrb[0].mxu0 %vm217_vm1, %v1120_v20 }
  0x48   : > { %1128 = vmatpush1.msk.msra.mxu0 %vm221_vm0, %v1126_v12  ;;  %1108 = vmatpush1.msk.msra.mxu1 %vm221_vm0, %v1106_v13 }
  0x49   : > { %454 = vmatprep.mubr.f32.mxu1 %v1358_v0  ;;  %798 = vmatprep.mubr.f32.mxu0 %v1358_v0 }
  0x4a   : > { %1132 = vmatprep.subr.msk.mxu0 %vm221_vm0, %v812_v21  ;;  %1112 = vmatprep.subr.msk.mxu1 %vm221_vm0, %v468_v22 }
  0x4f   : > { %1109 = vmatmul.mubr.msk.f32.vlgmr.msra.gmra.mrb[0].mxu1 %vm217_vm1, %v1105_v24  ;;  %1129 = vmatmul.mubr.msk.f32.vlgmr.msra.gmra.mrb[0].mxu0 %vm217_vm1, %v1125_v25 }
  0x50   : > { %1133 = vmatpush1.msk.msra.mxu0 %vm221_vm0, %v1131_v17  ;;  %1113 = vmatpush1.msk.msra.mxu1 %vm221_vm0, %v1111_v18 }
  0x51   : > { %540 = vmatprep.mubr.f32.mxu1 %v1358_v0  ;;  %884 = vmatprep.mubr.f32.mxu0 %v1358_v0 }
  0x52   : > { %1137 = vmatprep.subr.msk.mxu0 %vm221_vm0, %v898_v26 }
  0x57   : > { %1114 = vmatmul.mubr.msk.f32.vlgmr.msra.gmra.mrb[0].mxu1 %vm217_vm1, %v1110_v27  ;;  %1134 = vmatmul.mubr.msk.f32.vlgmr.msra.gmra.mrb[0].mxu0 %vm217_vm1, %v1130_v28 }
  0x58   : > { %1138 = vmatpush1.msk.msra.mxu0 %vm221_vm0, %v1136_v23  ;;  %970 = vmatprep.mubr.f32.mxu0 %v1358_v0 }
  0x5f   : > { %1139 = vmatmul.mubr.msk.f32.vlgmr.msra.gmra.mrb[0].mxu0 %vm217_vm1, %v1135_v29 }
  0xc3   : > { %v983_v33 = vpop.permute.xlu0 %982 }
 0x12a   : > { %v542_v30 = vpop.f32.mrb[0].mxu1 }
 0x12b   : > { %v544_v31 = vpop.f32.mrb[1].mxu1 }
 0x132   : > { %v972_v32 = vpop.f32.mrb[0].mxu0 }
 0x133   : > { %v1146_v34 = vadd.f32 %v972_v32, %v542_v30  ;;  %v974_v35 = vpop.f32.mrb[1].mxu0 }
 0x134   : > { %v1147_v36 = vadd.f32 %v974_v35, %v544_v31 }
 0x135   : > { %v985_v37 = vadd.f32 %v1146_v34, %v983_v33 }
 0x136   : > { %v986_v38 = vadd.f32 %v1147_v36, %v983_v33 }
 0x137   : > { %987 = vst [vmem:[%s206_s23] sm:$0xff] %v985_v37 }
 0x138   : > { %988 = vst [vmem:[%s206_s23 + $0x8] sm:$0xff] %v986_v38 }
 0x139   : > { %1284 = shalt.err (!%p1281_p4)
}
 0x13a   : > { %s1285_s11 = scalar_lea.hbm %s1583_s5, 256  ;;  %s1289_s4 = scalar_lea.hbm %s1635_s3, 512 }
 0x13b   : > { %p1286_p6 = scmp.ne.s32.totalorder %s1583_s5, %s1285_s11  ;;  %p1290_p12 = scmp.lt.u32.totalorder %s1583_s5, %s1635_s3 }
 0x13c   : > { %p1291_p1 = scmp.lt.u32.totalorder %s1289_s4, %s1285_s11  ;;  %p1293_p8 = scmp.lt.u32.totalorder %s1285_s11, %s1583_s5 }
 0x13d   : > { %p1287_p7 = pnand %p1286_p6, %p1643_p9 }
 0x13e   : > { %p1292_p3 = por %p1291_p1, %p1290_p12 }
 0x13f   : > { %p1288_p10 = pneg %p1287_p7 }
 0x140   : > { %p1294_p11 = por %p1293_p8, %p1292_p3 }
 0x142   : > { %p1295_p0 = pnand %p1294_p11, %p1288_p10 }
 0x144   : > { %1298 = shalt.err (!%p1295_p0)
}
 0x145   : > { %1167 = dma.vmem_to_hbm [thread:$0]  (%p1643_p9), %s1585_s28, 256, %s1583_s5, %s990_s6  }
 0x146 PF: > { %s1018_s10 = sand.u32 1, %s1333_s12   ;;  %p1644_p5 = scmp.ne.s32.totalorder %s1640_s27, 0 }
 0x147   : > { %p1645_p13 = scmp.ge.s32.totalorder %s1353_s17, 2  ;;  %s1019_s22 = scalar_lea.sflag [#allocation4], %s1018_s10 }
 0x149   : > { %p1174_p2 = pnand %p1645_p13, %p1644_p5 }
 0x14b   : > { %1328 = dma.done.wait (!%p1174_p2), %s1019_s22, 256  }
 0x14c   : > { %1330 = vsyncadd (!%p1174_p2), %s1019_s22, 4294967040  ;;  %s19_s17 = sadd.s32 1, %s1353_s17   ;;  %s1646_s12 = smov %s1337_s13 }
 0x14d   : > { %p16_p4 = scmp.ge.s32.totalorder %s19_s17, 4   ;;  %s1647_s13 = smov %s1341_s14 }
 0x14e   : > { %s1648_s14 = smov %s1437_s26  ;;  %s1649_s15 = smov %s1349_s16 }
 0x14f   : > { %s1650_s16 = smov %s1652_s20  ;;  %18 = sbr.rel (!%p16_p4) target bundleno = 6 (0x6), region = 93 }
 0x156   :  { %1024 = vsyncpa [#allocation3], 1 }
 0x157   :  { %1026 = vsyncpa [#allocation3 + $0x1], 1 }
 0x158   :  { %1027 = vsyncpa [#allocation4], 1 }
 0x159   :  { %1029 = vsyncpa [#allocation4 + $0x1], 1 }

</bundles_post_ra>
